<compile_context>
chip_gen: v5e
topology: v5e:2x2
jax: 0.10.0
libtpu: 0.0.40
codegen_flags: <defaults>
</compile_context>

<pallas_src>
import functools

import jax
import jax.numpy as jnp
import numpy as np
from jax import lax
from jax.experimental import pallas as pl
from jax.experimental.pallas import tpu as pltpu

# --- small, module-consistent shapes -----------------------------------------
B, T, D = 2, 8, 32          # batch, seq, d_model
H = 4                       # encoder_attention_heads
HEAD_DIM = D // H
FFN_DIM = 64                # encoder_ffn_dim
GATE_DIM = 16               # clsr_gate_dim
LN_EPS = 1e-5
SCALE = HEAD_DIM ** -0.5


# --- in-kernel helpers --------------------------------------------------------
def _layer_norm(h, w, b):
    mu = jnp.mean(h, axis=-1, keepdims=True)
    var = jnp.mean((h - mu) ** 2, axis=-1, keepdims=True)
    return (h - mu) * lax.rsqrt(var + LN_EPS) * w + b


def _gelu_exact(x):
    # matches torch.nn.functional.gelu (erf form); kept for module parity
    return 0.5 * x * (1.0 + lax.erf(x * (2.0 ** -0.5)))


# --- the Pallas kernel: one grid step == one batch element --------------------
def _encoder_layer_kernel(
    x_ref, mask_ref, wqkvb_ref, wob_ref, w1b_ref, w2_ref, vec_ref,
    out_ref, gate_ref,
    *, num_heads, head_dim, ffn_dim, gate_dim, scale,
):
    x = x_ref[0]                      # (T, D) rows of this batch element
    t, d = x.shape
    mask = mask_ref[0]                # (T, T) additive attention mask

    # small-vector slab rows (packed in the wrapper)
    ln1_w = vec_ref[0:1, :]
    ln1_b = vec_ref[1:2, :]
    ln2_w = vec_ref[2:3, :]
    ln2_b = vec_ref[3:4, :]
    b2s = vec_ref[4:5, :]
    b2l = vec_ref[5:6, :]
    hmask = vec_ref[6:7, :]           # layer_head_mask expanded to 8-lane groups
    wgo = vec_ref[7:8, 0:gate_dim]    # gate_out weight (1, GATE)

    # ---------------- self-attention block (pre-LN) --------------------------
    h1 = _layer_norm(x, ln1_w, ln1_b)
    # fused QKV: one (T,D)@(D,3D) matmul; last weight row is the fused bias
    qkv = (jnp.dot(h1, wqkvb_ref[0:d, :], preferred_element_type=jnp.float32)
           + wqkvb_ref[d:d + 1, :])
    q = qkv[:, 0:d] * scale
    k = qkv[:, d:2 * d]
    v = qkv[:, 2 * d:3 * d]

    # per-head scores/softmax on 8-lane head groups; heads stay lane-adjacent
    ctx_parts = []
    for hh in range(num_heads):
        sl = slice(hh * head_dim, (hh + 1) * head_dim)
        s = lax.dot_general(q[:, sl], k[:, sl], (((1,), (1,)), ((), ())),
                            preferred_element_type=jnp.float32) + mask
        s = s - jnp.max(s, axis=-1, keepdims=True)
        e = jnp.exp(s)
        # TODO(synk): at real scale use pl.reciprocal(row_sum, approx=True) (EUP slot)
        p = e / jnp.sum(e, axis=-1, keepdims=True)
        ctx_parts.append(jnp.dot(p, v[:, sl], preferred_element_type=jnp.float32))
    ctx = jnp.concatenate(ctx_parts, axis=-1) * hmask      # (T, D), layer_head_mask

    # single (T,D)@(D,D) output projection on lane-concatenated heads
    attn = (jnp.dot(ctx, wob_ref[0:d, :], preferred_element_type=jnp.float32)
            + wob_ref[d:d + 1, :])
    h = x + attn                                            # residual (dropout = id)

    # ---------------- CLSR FFN block (shared | lang | gate fused) ------------
    h2 = _layer_norm(h, ln2_w, ln2_b)
    # columns: [0:F) shared fc1, [F:2F) lang fc1, [2F:2F+GATE) gate_in
    mid = (jnp.dot(h2, w1b_ref[0:d, :], preferred_element_type=jnp.float32)
           + w1b_ref[d:d + 1, :])
    gate_h = jnp.maximum(mid[:, 2 * ffn_dim:], 0.0)         # relu, (T, GATE)
    G = jnp.sum(gate_h * wgo, axis=-1, keepdims=True)       # (T, 1) gate logit
    g = (G >= 0.0).astype(jnp.float32)                      # hard gate (eval mode)

    act = _gelu_exact(mid[:, :2 * ffn_dim])                 # (T, 2F)
    col = lax.broadcasted_iota(jnp.int32, (1, 2 * ffn_dim), 1)
    act = act * jnp.where(col < ffn_dim, 1.0 - g, g)        # branch select
    ffn = (jnp.dot(act, w2_ref[...], preferred_element_type=jnp.float32)
           + (1.0 - g) * b2s + g * b2l)                     # gate-weighted fc2 biases

    out_ref[0, :, :] = (h + ffn).astype(out_ref.dtype)

    # lane-dense gate store: relayout (T,1) -> (1,T) via select+reduce (no transpose)
    eye_tt = (lax.broadcasted_iota(jnp.int32, (t, t), 0)
              == lax.broadcasted_iota(jnp.int32, (t, t), 1))
    gate_ref[0, :, :] = jnp.sum(jnp.where(eye_tt, g, 0.0), axis=0,
                                keepdims=True).astype(gate_ref.dtype)


# --- wrapper ------------------------------------------------------------------
def distil_whisper_encoder_layer(x, attn_mask, head_mask, params):
    b, t, d = x.shape
    h = head_mask.shape[0]
    hd = d // h
    f = params["w1s"].shape[1]
    gd = params["wgi"].shape[1]
    assert gd <= d, "gate dim must fit in one slab row at this packing"

    # ---- layout plumbing: weights re-packed once, biases ride as extra rows ----
    wqkv = jnp.concatenate([params["wq"], params["wk"], params["wv"]], axis=1)
    bqkv = jnp.concatenate([params["bq"], jnp.zeros((1, d), jnp.float32),
                            params["bv"]], axis=1)                 # k_proj: no bias
    wqkvb = jnp.concatenate([wqkv, bqkv], axis=0)                   # (D+1, 3D)

    wob = jnp.concatenate([params["wo"], params["bo"]], axis=0)     # (D+1, D)

    w1 = jnp.concatenate([params["w1s"], params["w1l"], params["wgi"]], axis=1)
    b1 = jnp.concatenate([params["b1s"], params["b1l"], params["bgi"]], axis=1)
    w1b = jnp.concatenate([w1, b1], axis=0)                         # (D+1, 2F+GATE)

    w2 = jnp.concatenate([params["w2s"], params["w2l"]], axis=0)    # (2F, D)

    hmask_lanes = jnp.repeat(head_mask.astype(jnp.float32), hd)[None, :]   # (1, D)
    wgo_row = jnp.concatenate([params["wgo"],
                               jnp.zeros((1, d - gd), jnp.float32)], axis=1)
    vec = jnp.concatenate([params["ln1_w"], params["ln1_b"],
                           params["ln2_w"], params["ln2_b"],
                           params["b2s"], params["b2l"],
                           hmask_lanes, wgo_row], axis=0)           # (8, D)

    mask_b = attn_mask[:, 0]                                        # (B, T, T)

    kernel = functools.partial(
        _encoder_layer_kernel, num_heads=h, head_dim=hd,
        ffn_dim=f, gate_dim=gd, scale=hd ** -0.5)

    out, gate = pl.pallas_call(
        kernel,
        grid=(b,),
        in_specs=[
            pl.BlockSpec((1, t, d), lambda i: (i, 0, 0)),           # x
            pl.BlockSpec((1, t, t), lambda i: (i, 0, 0)),           # attention mask
            pl.BlockSpec((d + 1, 3 * d), lambda i: (0, 0)),         # fused QKV (+bias)
            pl.BlockSpec((d + 1, d), lambda i: (0, 0)),             # out proj (+bias)
            pl.BlockSpec((d + 1, 2 * f + gd), lambda i: (0, 0)),    # fused fc1|gate (+bias)
            pl.BlockSpec((2 * f, d), lambda i: (0, 0)),             # fused fc2
            pl.BlockSpec((8, d), lambda i: (0, 0)),                 # small-vector slab
        ],
        out_specs=(
            pl.BlockSpec((1, t, d), lambda i: (i, 0, 0)),           # hidden states
            pl.BlockSpec((1, 1, t), lambda i: (i, 0, 0)),           # lane-dense gate
        ),
        out_shape=(jax.ShapeDtypeStruct((b, t, d), jnp.float32),
                   jax.ShapeDtypeStruct((b, 1, t), jnp.float32)),
        compiler_params=pltpu.CompilerParams(
            dimension_semantics=("parallel",)),                     # both TCs on v7x
    )(x, mask_b, wqkvb, wob, w1b, w2, vec)

    return out, gate.reshape(b, t)


# --- deterministic parameter init (shapes from the module __init__) -----------
def init_params(key):
    keys = iter(jax.random.split(key, 32))

    def w(shape, scale=0.02):
        return scale * jax.random.normal(next(keys), shape, jnp.float32)

    return dict(
        ln1_w=1.0 + w((1, D)), ln1_b=w((1, D)),
        wq=w((D, D)), bq=w((1, D)),
        wk=w((D, D)),                       # k_proj has no bias in WhisperAttention
        wv=w((D, D)), bv=w((1, D)),
        wo=w((D, D)), bo=w((1, D)),
        ln2_w=1.0 + w((1, D)), ln2_b=w((1, D)),
        wgi=w((D, GATE_DIM)), bgi=w((1, GATE_DIM)),
        wgo=w((1, GATE_DIM)),               # gate_out: Linear(gate_dim, 1, bias=False)
        w1s=w((D, FFN_DIM)), b1s=w((1, FFN_DIM)),
        w2s=w((FFN_DIM, D)), b2s=w((1, D)),
        w1l=w((D, FFN_DIM)), b1l=w((1, FFN_DIM)),
        w2l=w((FFN_DIM, D)), b2l=w((1, D)),
    )


# --- pure-JAX reference (same eval-mode math) for a correctness check ----------
def reference(x, mask, head_mask, p):
    def ln(h, w, b):
        mu = h.mean(-1, keepdims=True)
        var = ((h - mu) ** 2).mean(-1, keepdims=True)
        return (h - mu) / jnp.sqrt(var + LN_EPS) * w + b

    h1 = ln(x, p["ln1_w"][0], p["ln1_b"][0])
    q = (h1 @ p["wq"] + p["bq"][0]) * SCALE
    k = h1 @ p["wk"]
    v = h1 @ p["wv"] + p["bv"][0]
    qh = q.reshape(B, T, H, HEAD_DIM).transpose(0, 2, 1, 3)
    kh = k.reshape(B, T, H, HEAD_DIM).transpose(0, 2, 1, 3)
    vh = v.reshape(B, T, H, HEAD_DIM).transpose(0, 2, 1, 3)
    scores = qh @ kh.transpose(0, 1, 3, 2) + mask
    probs = jax.nn.softmax(scores, axis=-1) * head_mask[None, :, None, None]
    attn = (probs @ vh).transpose(0, 2, 1, 3).reshape(B, T, D)
    attn = attn @ p["wo"] + p["bo"][0]
    h = x + attn

    h2 = ln(h, p["ln2_w"][0], p["ln2_b"][0])
    gi = jax.nn.relu(h2 @ p["wgi"] + p["bgi"][0])
    G = jnp.sum(gi * p["wgo"][0], axis=-1, keepdims=True)
    g = (G >= 0.0).astype(jnp.float32)

    def ffn(w1, b1, w2, b2):
        mid = jax.nn.gelu(h2 @ w1 + b1[0], approximate=False)
        return mid @ w2 + b2[0]

    out = h + g * ffn(p["w1l"], p["b1l"], p["w2l"], p["b2l"]) \
            + (1.0 - g) * ffn(p["w1s"], p["b1s"], p["w2s"], p["b2s"])
    return out, g[..., 0], G[..., 0]


if __name__ == "__main__":
    key = jax.random.PRNGKey(0)
    k_x, k_p = jax.random.split(key)

    x = jax.random.normal(k_x, (B, T, D), jnp.float32)
    attn_mask = jnp.zeros((B, 1, T, T), jnp.float32)
    attn_mask = attn_mask.at[1, 0, :, T - 2:].set(-1e9)   # pad last 2 keys, batch 1
    head_mask = jnp.array([1.0, 0.5, 1.0, 0.75], jnp.float32)
    params = init_params(k_p)

    hidden, gate = distil_whisper_encoder_layer(x, attn_mask, head_mask, params)
    hidden = jax.block_until_ready(hidden)
    gate = jax.block_until_ready(gate)

    ref_h, ref_g, ref_G = reference(x, attn_mask, head_mask, params)
    # Rows whose gate logit is within float-rounding distance of 0 could flip
    # between equally-valid accumulation orders; exclude those from the checks.
    safe = np.abs(np.asarray(ref_G)) > 1e-5
    np.testing.assert_array_equal(np.asarray(gate)[safe], np.asarray(ref_g)[safe])
    np.testing.assert_allclose(np.asarray(hidden)[safe], np.asarray(ref_h)[safe],
                               rtol=1e-4, atol=1e-4)
    print("KERNEL_OK")
</pallas_src>

<mosaic_0001>
module attributes {stable_mosaic.version = 11 : i64} {
  func.func @_encoder_layer_kernel(%arg0: i32, %arg1: memref<1x8x32xf32, #tpu.memory_space<vmem>>, %arg2: memref<1x8x8xf32, #tpu.memory_space<vmem>>, %arg3: memref<33x96xf32, #tpu.memory_space<vmem>>, %arg4: memref<33x32xf32, #tpu.memory_space<vmem>>, %arg5: memref<33x144xf32, #tpu.memory_space<vmem>>, %arg6: memref<128x32xf32, #tpu.memory_space<vmem>>, %arg7: memref<8x32xf32, #tpu.memory_space<vmem>>, %arg8: memref<1x8x32xf32, #tpu.memory_space<vmem>>, %arg9: memref<1x1x8xf32, #tpu.memory_space<vmem>>) attributes {dimension_semantics = [#tpu.dimension_semantics<parallel>], iteration_bounds = array<i64: 2>, scalar_prefetch = 0 : i64, scratch_operands = 0 : i64, tpu.core_type = #tpu.core_type<tc>, window_params = [{transform_indices = @transform_0, window_bounds = array<i64: 1, 8, 32>}, {transform_indices = @transform_1, window_bounds = array<i64: 1, 8, 8>}, {pipeline_mode = #tpu.pipeline_mode<synchronous>, transform_indices = @transform_2, window_bounds = array<i64: 33, 96>}, {pipeline_mode = #tpu.pipeline_mode<synchronous>, transform_indices = @transform_3, window_bounds = array<i64: 33, 32>}, {pipeline_mode = #tpu.pipeline_mode<synchronous>, transform_indices = @transform_4, window_bounds = array<i64: 33, 144>}, {pipeline_mode = #tpu.pipeline_mode<synchronous>, transform_indices = @transform_5, window_bounds = array<i64: 128, 32>}, {pipeline_mode = #tpu.pipeline_mode<synchronous>, transform_indices = @transform_6, window_bounds = array<i64: 8, 32>}, {transform_indices = @transform_7, window_bounds = array<i64: 1, 8, 32>}, {transform_indices = @transform_8, window_bounds = array<i64: 1, 1, 8>}]} {
    %c0 = arith.constant 0 : index
    %c0_0 = arith.constant 0 : index
    %c0_1 = arith.constant 0 : index
    %0 = vector.load %arg1[%c0, %c0_0, %c0_1] : memref<1x8x32xf32, #tpu.memory_space<vmem>>, vector<1x8x32xf32>
    %1 = vector.shape_cast %0 : vector<1x8x32xf32> to vector<8x32xf32>
    %c0_2 = arith.constant 0 : index
    %c0_3 = arith.constant 0 : index
    %c0_4 = arith.constant 0 : index
    %2 = vector.load %arg2[%c0_2, %c0_3, %c0_4] : memref<1x8x8xf32, #tpu.memory_space<vmem>>, vector<1x8x8xf32>
    %3 = vector.shape_cast %2 : vector<1x8x8xf32> to vector<8x8xf32>
    %c0_5 = arith.constant 0 : index
    %c0_6 = arith.constant 0 : index
    %4 = vector.load %arg7[%c0_5, %c0_6] : memref<8x32xf32, #tpu.memory_space<vmem>>, vector<1x32xf32>
    %c1 = arith.constant 1 : index
    %c0_7 = arith.constant 0 : index
    %5 = vector.load %arg7[%c1, %c0_7] : memref<8x32xf32, #tpu.memory_space<vmem>>, vector<1x32xf32>
    %c2 = arith.constant 2 : index
    %c0_8 = arith.constant 0 : index
    %6 = vector.load %arg7[%c2, %c0_8] : memref<8x32xf32, #tpu.memory_space<vmem>>, vector<1x32xf32>
    %c3 = arith.constant 3 : index
    %c0_9 = arith.constant 0 : index
    %7 = vector.load %arg7[%c3, %c0_9] : memref<8x32xf32, #tpu.memory_space<vmem>>, vector<1x32xf32>
    %c4 = arith.constant 4 : index
    %c0_10 = arith.constant 0 : index
    %8 = vector.load %arg7[%c4, %c0_10] : memref<8x32xf32, #tpu.memory_space<vmem>>, vector<1x32xf32>
    %c5 = arith.constant 5 : index
    %c0_11 = arith.constant 0 : index
    %9 = vector.load %arg7[%c5, %c0_11] : memref<8x32xf32, #tpu.memory_space<vmem>>, vector<1x32xf32>
    %c6 = arith.constant 6 : index
    %c0_12 = arith.constant 0 : index
    %10 = vector.load %arg7[%c6, %c0_12] : memref<8x32xf32, #tpu.memory_space<vmem>>, vector<1x32xf32>
    %c7 = arith.constant 7 : index
    %c0_13 = arith.constant 0 : index
    %11 = vector.load %arg7[%c7, %c0_13] : memref<8x32xf32, #tpu.memory_space<vmem>>, vector<1x16xf32>
    %cst = arith.constant dense<0.000000e+00> : vector<8xf32>
    %12 = vector.multi_reduction <add>, %1, %cst [1] : vector<8x32xf32> to vector<8xf32>
    %13 = vector.shape_cast %12 : vector<8xf32> to vector<8x1xf32>
    %cst_14 = arith.constant 3.200000e+01 : f32
    %14 = vector.broadcast %cst_14 : f32 to vector<8x1xf32>
    %15 = arith.divf %13, %14 : vector<8x1xf32>
    %16 = vector.broadcast %15 : vector<8x1xf32> to vector<8x32xf32>
    %17 = arith.subf %1, %16 : vector<8x32xf32>
    %18 = arith.mulf %17, %17 : vector<8x32xf32>
    %cst_15 = arith.constant dense<0.000000e+00> : vector<8xf32>
    %19 = vector.multi_reduction <add>, %18, %cst_15 [1] : vector<8x32xf32> to vector<8xf32>
    %20 = vector.shape_cast %19 : vector<8xf32> to vector<8x1xf32>
    %cst_16 = arith.constant 3.200000e+01 : f32
    %21 = vector.broadcast %cst_16 : f32 to vector<8x1xf32>
    %22 = arith.divf %20, %21 : vector<8x1xf32>
    %23 = vector.broadcast %15 : vector<8x1xf32> to vector<8x32xf32>
    %24 = arith.subf %1, %23 : vector<8x32xf32>
    %cst_17 = arith.constant 9.99999974E-6 : f32
    %25 = vector.broadcast %cst_17 : f32 to vector<8x1xf32>
    %26 = arith.addf %22, %25 : vector<8x1xf32>
    %27 = math.rsqrt %26 : vector<8x1xf32>
    %28 = vector.broadcast %27 : vector<8x1xf32> to vector<8x32xf32>
    %29 = arith.mulf %24, %28 : vector<8x32xf32>
    %30 = vector.broadcast %4 : vector<1x32xf32> to vector<8x32xf32>
    %31 = arith.mulf %29, %30 : vector<8x32xf32>
    %32 = vector.broadcast %5 : vector<1x32xf32> to vector<8x32xf32>
    %33 = arith.addf %31, %32 : vector<8x32xf32>
    %c0_18 = arith.constant 0 : index
    %c0_19 = arith.constant 0 : index
    %34 = vector.load %arg3[%c0_18, %c0_19] : memref<33x96xf32, #tpu.memory_space<vmem>>, vector<32x96xf32>
    %cst_20 = arith.constant dense<0.000000e+00> : vector<8x96xf32>
    %35 = tpu.matmul %33, %34, %cst_20 {dimension_numbers = #tpu.dot_dimension_numbers<[1], [0], [0], [1], [0, 0, 1, 1], [], []>} : vector<8x32xf32>, vector<32x96xf32>, vector<8x96xf32> -> vector<8x96xf32>
    %c32 = arith.constant 32 : index
    %c0_21 = arith.constant 0 : index
    %36 = vector.load %arg3[%c32, %c0_21] : memref<33x96xf32, #tpu.memory_space<vmem>>, vector<1x96xf32>
    %37 = vector.broadcast %36 : vector<1x96xf32> to vector<8x96xf32>
    %38 = arith.addf %35, %37 : vector<8x96xf32>
    %39 = vector.extract_strided_slice %38 {offsets = [0, 0], sizes = [8, 32], strides = [1, 1]} : vector<8x96xf32> to vector<8x32xf32>
    %cst_22 = arith.constant 0.353553385 : f32
    %40 = vector.broadcast %cst_22 : f32 to vector<8x32xf32>
    %41 = arith.mulf %39, %40 : vector<8x32xf32>
    %42 = vector.extract_strided_slice %38 {offsets = [0, 32], sizes = [8, 32], strides = [1, 1]} : vector<8x96xf32> to vector<8x32xf32>
    %43 = vector.extract_strided_slice %38 {offsets = [0, 64], sizes = [8, 32], strides = [1, 1]} : vector<8x96xf32> to vector<8x32xf32>
    %44 = vector.extract_strided_slice %41 {offsets = [0, 0], sizes = [8, 8], strides = [1, 1]} : vector<8x32xf32> to vector<8x8xf32>
    %45 = vector.extract_strided_slice %42 {offsets = [0, 0], sizes = [8, 8], strides = [1, 1]} : vector<8x32xf32> to vector<8x8xf32>
    %cst_23 = arith.constant dense<0.000000e+00> : vector<8x8xf32>
    %46 = tpu.matmul %44, %45, %cst_23 {dimension_numbers = #tpu.dot_dimension_numbers<[1], [1], [0], [0], [0, 0, 1, 0], [], []>} : vector<8x8xf32>, vector<8x8xf32>, vector<8x8xf32> -> vector<8x8xf32>
    %47 = arith.addf %46, %3 : vector<8x8xf32>
    %cst_24 = arith.constant dense<0xFF800000> : vector<8xf32>
    %48 = vector.multi_reduction <maximumf>, %47, %cst_24 [1] : vector<8x8xf32> to vector<8xf32>
    %49 = vector.shape_cast %48 : vector<8xf32> to vector<8x1xf32>
    %50 = vector.broadcast %49 : vector<8x1xf32> to vector<8x8xf32>
    %51 = arith.subf %47, %50 : vector<8x8xf32>
    %52 = math.exp %51 : vector<8x8xf32>
    %cst_25 = arith.constant dense<0.000000e+00> : vector<8xf32>
    %53 = vector.multi_reduction <add>, %52, %cst_25 [1] : vector<8x8xf32> to vector<8xf32>
    %54 = vector.shape_cast %53 : vector<8xf32> to vector<8x1xf32>
    %55 = vector.broadcast %54 : vector<8x1xf32> to vector<8x8xf32>
    %56 = arith.divf %52, %55 : vector<8x8xf32>
    %57 = vector.extract_strided_slice %43 {offsets = [0, 0], sizes = [8, 8], strides = [1, 1]} : vector<8x32xf32> to vector<8x8xf32>
    %cst_26 = arith.constant dense<0.000000e+00> : vector<8x8xf32>
    %58 = tpu.matmul %56, %57, %cst_26 {dimension_numbers = #tpu.dot_dimension_numbers<[1], [0], [0], [1], [0, 0, 1, 1], [], []>} : vector<8x8xf32>, vector<8x8xf32>, vector<8x8xf32> -> vector<8x8xf32>
    %59 = vector.extract_strided_slice %41 {offsets = [0, 8], sizes = [8, 8], strides = [1, 1]} : vector<8x32xf32> to vector<8x8xf32>
    %60 = vector.extract_strided_slice %42 {offsets = [0, 8], sizes = [8, 8], strides = [1, 1]} : vector<8x32xf32> to vector<8x8xf32>
    %cst_27 = arith.constant dense<0.000000e+00> : vector<8x8xf32>
    %61 = tpu.matmul %59, %60, %cst_27 {dimension_numbers = #tpu.dot_dimension_numbers<[1], [1], [0], [0], [0, 0, 1, 0], [], []>} : vector<8x8xf32>, vector<8x8xf32>, vector<8x8xf32> -> vector<8x8xf32>
    %62 = arith.addf %61, %3 : vector<8x8xf32>
    %cst_28 = arith.constant dense<0xFF800000> : vector<8xf32>
    %63 = vector.multi_reduction <maximumf>, %62, %cst_28 [1] : vector<8x8xf32> to vector<8xf32>
    %64 = vector.shape_cast %63 : vector<8xf32> to vector<8x1xf32>
    %65 = vector.broadcast %64 : vector<8x1xf32> to vector<8x8xf32>
    %66 = arith.subf %62, %65 : vector<8x8xf32>
    %67 = math.exp %66 : vector<8x8xf32>
    %cst_29 = arith.constant dense<0.000000e+00> : vector<8xf32>
    %68 = vector.multi_reduction <add>, %67, %cst_29 [1] : vector<8x8xf32> to vector<8xf32>
    %69 = vector.shape_cast %68 : vector<8xf32> to vector<8x1xf32>
    %70 = vector.broadcast %69 : vector<8x1xf32> to vector<8x8xf32>
    %71 = arith.divf %67, %70 : vector<8x8xf32>
    %72 = vector.extract_strided_slice %43 {offsets = [0, 8], sizes = [8, 8], strides = [1, 1]} : vector<8x32xf32> to vector<8x8xf32>
    %cst_30 = arith.constant dense<0.000000e+00> : vector<8x8xf32>
    %73 = tpu.matmul %71, %72, %cst_30 {dimension_numbers = #tpu.dot_dimension_numbers<[1], [0], [0], [1], [0, 0, 1, 1], [], []>} : vector<8x8xf32>, vector<8x8xf32>, vector<8x8xf32> -> vector<8x8xf32>
    %74 = vector.extract_strided_slice %41 {offsets = [0, 16], sizes = [8, 8], strides = [1, 1]} : vector<8x32xf32> to vector<8x8xf32>
    %75 = vector.extract_strided_slice %42 {offsets = [0, 16], sizes = [8, 8], strides = [1, 1]} : vector<8x32xf32> to vector<8x8xf32>
    %cst_31 = arith.constant dense<0.000000e+00> : vector<8x8xf32>
    %76 = tpu.matmul %74, %75, %cst_31 {dimension_numbers = #tpu.dot_dimension_numbers<[1], [1], [0], [0], [0, 0, 1, 0], [], []>} : vector<8x8xf32>, vector<8x8xf32>, vector<8x8xf32> -> vector<8x8xf32>
    %77 = arith.addf %76, %3 : vector<8x8xf32>
    %cst_32 = arith.constant dense<0xFF800000> : vector<8xf32>
    %78 = vector.multi_reduction <maximumf>, %77, %cst_32 [1] : vector<8x8xf32> to vector<8xf32>
    %79 = vector.shape_cast %78 : vector<8xf32> to vector<8x1xf32>
    %80 = vector.broadcast %79 : vector<8x1xf32> to vector<8x8xf32>
    %81 = arith.subf %77, %80 : vector<8x8xf32>
    %82 = math.exp %81 : vector<8x8xf32>
    %cst_33 = arith.constant dense<0.000000e+00> : vector<8xf32>
    %83 = vector.multi_reduction <add>, %82, %cst_33 [1] : vector<8x8xf32> to vector<8xf32>
    %84 = vector.shape_cast %83 : vector<8xf32> to vector<8x1xf32>
    %85 = vector.broadcast %84 : vector<8x1xf32> to vector<8x8xf32>
    %86 = arith.divf %82, %85 : vector<8x8xf32>
    %87 = vector.extract_strided_slice %43 {offsets = [0, 16], sizes = [8, 8], strides = [1, 1]} : vector<8x32xf32> to vector<8x8xf32>
    %cst_34 = arith.constant dense<0.000000e+00> : vector<8x8xf32>
    %88 = tpu.matmul %86, %87, %cst_34 {dimension_numbers = #tpu.dot_dimension_numbers<[1], [0], [0], [1], [0, 0, 1, 1], [], []>} : vector<8x8xf32>, vector<8x8xf32>, vector<8x8xf32> -> vector<8x8xf32>
    %89 = vector.extract_strided_slice %41 {offsets = [0, 24], sizes = [8, 8], strides = [1, 1]} : vector<8x32xf32> to vector<8x8xf32>
    %90 = vector.extract_strided_slice %42 {offsets = [0, 24], sizes = [8, 8], strides = [1, 1]} : vector<8x32xf32> to vector<8x8xf32>
    %cst_35 = arith.constant dense<0.000000e+00> : vector<8x8xf32>
    %91 = tpu.matmul %89, %90, %cst_35 {dimension_numbers = #tpu.dot_dimension_numbers<[1], [1], [0], [0], [0, 0, 1, 0], [], []>} : vector<8x8xf32>, vector<8x8xf32>, vector<8x8xf32> -> vector<8x8xf32>
    %92 = arith.addf %91, %3 : vector<8x8xf32>
    %cst_36 = arith.constant dense<0xFF800000> : vector<8xf32>
    %93 = vector.multi_reduction <maximumf>, %92, %cst_36 [1] : vector<8x8xf32> to vector<8xf32>
    %94 = vector.shape_cast %93 : vector<8xf32> to vector<8x1xf32>
    %95 = vector.broadcast %94 : vector<8x1xf32> to vector<8x8xf32>
    %96 = arith.subf %92, %95 : vector<8x8xf32>
    %97 = math.exp %96 : vector<8x8xf32>
    %cst_37 = arith.constant dense<0.000000e+00> : vector<8xf32>
    %98 = vector.multi_reduction <add>, %97, %cst_37 [1] : vector<8x8xf32> to vector<8xf32>
    %99 = vector.shape_cast %98 : vector<8xf32> to vector<8x1xf32>
    %100 = vector.broadcast %99 : vector<8x1xf32> to vector<8x8xf32>
    %101 = arith.divf %97, %100 : vector<8x8xf32>
    %102 = vector.extract_strided_slice %43 {offsets = [0, 24], sizes = [8, 8], strides = [1, 1]} : vector<8x32xf32> to vector<8x8xf32>
    %cst_38 = arith.constant dense<0.000000e+00> : vector<8x8xf32>
    %103 = tpu.matmul %101, %102, %cst_38 {dimension_numbers = #tpu.dot_dimension_numbers<[1], [0], [0], [1], [0, 0, 1, 1], [], []>} : vector<8x8xf32>, vector<8x8xf32>, vector<8x8xf32> -> vector<8x8xf32>
    %104 = tpu.concatenate %58, %73, %88, %103 in 1 : vector<8x8xf32>, vector<8x8xf32>, vector<8x8xf32>, vector<8x8xf32> -> vector<8x32xf32>
    %105 = vector.broadcast %10 : vector<1x32xf32> to vector<8x32xf32>
    %106 = arith.mulf %104, %105 : vector<8x32xf32>
    %c0_39 = arith.constant 0 : index
    %c0_40 = arith.constant 0 : index
    %107 = vector.load %arg4[%c0_39, %c0_40] : memref<33x32xf32, #tpu.memory_space<vmem>>, vector<32x32xf32>
    %cst_41 = arith.constant dense<0.000000e+00> : vector<8x32xf32>
    %108 = tpu.matmul %106, %107, %cst_41 {dimension_numbers = #tpu.dot_dimension_numbers<[1], [0], [0], [1], [0, 0, 1, 1], [], []>} : vector<8x32xf32>, vector<32x32xf32>, vector<8x32xf32> -> vector<8x32xf32>
    %c32_42 = arith.constant 32 : index
    %c0_43 = arith.constant 0 : index
    %109 = vector.load %arg4[%c32_42, %c0_43] : memref<33x32xf32, #tpu.memory_space<vmem>>, vector<1x32xf32>
    %110 = vector.broadcast %109 : vector<1x32xf32> to vector<8x32xf32>
    %111 = arith.addf %108, %110 : vector<8x32xf32>
    %112 = arith.addf %1, %111 : vector<8x32xf32>
    %cst_44 = arith.constant dense<0.000000e+00> : vector<8xf32>
    %113 = vector.multi_reduction <add>, %112, %cst_44 [1] : vector<8x32xf32> to vector<8xf32>
    %114 = vector.shape_cast %113 : vector<8xf32> to vector<8x1xf32>
    %cst_45 = arith.constant 3.200000e+01 : f32
    %115 = vector.broadcast %cst_45 : f32 to vector<8x1xf32>
    %116 = arith.divf %114, %115 : vector<8x1xf32>
    %117 = vector.broadcast %116 : vector<8x1xf32> to vector<8x32xf32>
    %118 = arith.subf %112, %117 : vector<8x32xf32>
    %119 = arith.mulf %118, %118 : vector<8x32xf32>
    %cst_46 = arith.constant dense<0.000000e+00> : vector<8xf32>
    %120 = vector.multi_reduction <add>, %119, %cst_46 [1] : vector<8x32xf32> to vector<8xf32>
    %121 = vector.shape_cast %120 : vector<8xf32> to vector<8x1xf32>
    %cst_47 = arith.constant 3.200000e+01 : f32
    %122 = vector.broadcast %cst_47 : f32 to vector<8x1xf32>
    %123 = arith.divf %121, %122 : vector<8x1xf32>
    %124 = vector.broadcast %116 : vector<8x1xf32> to vector<8x32xf32>
    %125 = arith.subf %112, %124 : vector<8x32xf32>
    %cst_48 = arith.constant 9.99999974E-6 : f32
    %126 = vector.broadcast %cst_48 : f32 to vector<8x1xf32>
    %127 = arith.addf %123, %126 : vector<8x1xf32>
    %128 = math.rsqrt %127 : vector<8x1xf32>
    %129 = vector.broadcast %128 : vector<8x1xf32> to vector<8x32xf32>
    %130 = arith.mulf %125, %129 : vector<8x32xf32>
    %131 = vector.broadcast %6 : vector<1x32xf32> to vector<8x32xf32>
    %132 = arith.mulf %130, %131 : vector<8x32xf32>
    %133 = vector.broadcast %7 : vector<1x32xf32> to vector<8x32xf32>
    %134 = arith.addf %132, %133 : vector<8x32xf32>
    %c0_49 = arith.constant 0 : index
    %c0_50 = arith.constant 0 : index
    %135 = vector.load %arg5[%c0_49, %c0_50] : memref<33x144xf32, #tpu.memory_space<vmem>>, vector<32x144xf32>
    %cst_51 = arith.constant dense<0.000000e+00> : vector<8x144xf32>
    %136 = tpu.matmul %134, %135, %cst_51 {dimension_numbers = #tpu.dot_dimension_numbers<[1], [0], [0], [1], [0, 0, 1, 1], [], []>} : vector<8x32xf32>, vector<32x144xf32>, vector<8x144xf32> -> vector<8x144xf32>
    %c32_52 = arith.constant 32 : index
    %c0_53 = arith.constant 0 : index
    %137 = vector.load %arg5[%c32_52, %c0_53] : memref<33x144xf32, #tpu.memory_space<vmem>>, vector<1x144xf32>
    %138 = vector.broadcast %137 : vector<1x144xf32> to vector<8x144xf32>
    %139 = arith.addf %136, %138 : vector<8x144xf32>
    %140 = vector.extract_strided_slice %139 {offsets = [0, 128], sizes = [8, 16], strides = [1, 1]} : vector<8x144xf32> to vector<8x16xf32>
    %cst_54 = arith.constant 0.000000e+00 : f32
    %141 = vector.broadcast %cst_54 : f32 to vector<8x16xf32>
    %142 = arith.maximumf %140, %141 : vector<8x16xf32>
    %143 = vector.broadcast %11 : vector<1x16xf32> to vector<8x16xf32>
    %144 = arith.mulf %142, %143 : vector<8x16xf32>
    %cst_55 = arith.constant dense<0.000000e+00> : vector<8xf32>
    %145 = vector.multi_reduction <add>, %144, %cst_55 [1] : vector<8x16xf32> to vector<8xf32>
    %146 = vector.shape_cast %145 : vector<8xf32> to vector<8x1xf32>
    %cst_56 = arith.constant 0.000000e+00 : f32
    %147 = vector.broadcast %cst_56 : f32 to vector<8x1xf32>
    %148 = arith.cmpf oge, %146, %147 : vector<8x1xf32>
    %149 = arith.extui %148 : vector<8x1xi1> to vector<8x1xi32>
    %150 = arith.sitofp %149 : vector<8x1xi32> to vector<8x1xf32>
    %151 = vector.extract_strided_slice %139 {offsets = [0, 0], sizes = [8, 128], strides = [1, 1]} : vector<8x144xf32> to vector<8x128xf32>
    %cst_57 = arith.constant 5.000000e-01 : f32
    %152 = vector.broadcast %cst_57 : f32 to vector<8x128xf32>
    %153 = arith.mulf %152, %151 : vector<8x128xf32>
    %cst_58 = arith.constant 0.707106769 : f32
    %154 = vector.broadcast %cst_58 : f32 to vector<8x128xf32>
    %155 = arith.mulf %151, %154 : vector<8x128xf32>
    %156 = math.erf %155 : vector<8x128xf32>
    %cst_59 = arith.constant 1.000000e+00 : f32
    %157 = vector.broadcast %cst_59 : f32 to vector<8x128xf32>
    %158 = arith.addf %157, %156 : vector<8x128xf32>
    %159 = arith.mulf %153, %158 : vector<8x128xf32>
    %160 = tpu.iota {dimensions = array<i32: 1>} : vector<1x128xi32>
    %c64_i32 = arith.constant 64 : i32
    %161 = vector.broadcast %c64_i32 : i32 to vector<1x128xi32>
    %162 = arith.cmpi slt, %160, %161 : vector<1x128xi32>
    %cst_60 = arith.constant 1.000000e+00 : f32
    %163 = vector.broadcast %cst_60 : f32 to vector<8x1xf32>
    %164 = arith.subf %163, %150 : vector<8x1xf32>
    %165 = vector.shape_cast %162 : vector<1x128xi1> to vector<1x128xi1>
    %166 = vector.broadcast %165 : vector<1x128xi1> to vector<8x128xi1>
    %167 = vector.shape_cast %164 : vector<8x1xf32> to vector<8x1xf32>
    %168 = vector.broadcast %167 : vector<8x1xf32> to vector<8x128xf32>
    %169 = vector.shape_cast %150 : vector<8x1xf32> to vector<8x1xf32>
    %170 = vector.broadcast %169 : vector<8x1xf32> to vector<8x128xf32>
    %171 = arith.select %166, %168, %170 : vector<8x128xi1>, vector<8x128xf32>
    %172 = arith.mulf %159, %171 : vector<8x128xf32>
    %c0_61 = arith.constant 0 : index
    %c0_62 = arith.constant 0 : index
    %173 = vector.load %arg6[%c0_61, %c0_62] : memref<128x32xf32, #tpu.memory_space<vmem>>, vector<128x32xf32>
    %cst_63 = arith.constant dense<0.000000e+00> : vector<8x32xf32>
    %174 = tpu.matmul %172, %173, %cst_63 {dimension_numbers = #tpu.dot_dimension_numbers<[1], [0], [0], [1], [0, 0, 1, 1], [], []>} : vector<8x128xf32>, vector<128x32xf32>, vector<8x32xf32> -> vector<8x32xf32>
    %cst_64 = arith.constant 1.000000e+00 : f32
    %175 = vector.broadcast %cst_64 : f32 to vector<8x1xf32>
    %176 = arith.subf %175, %150 : vector<8x1xf32>
    %177 = vector.broadcast %176 : vector<8x1xf32> to vector<8x32xf32>
    %178 = vector.broadcast %8 : vector<1x32xf32> to vector<8x32xf32>
    %179 = arith.mulf %177, %178 : vector<8x32xf32>
    %180 = arith.addf %174, %179 : vector<8x32xf32>
    %181 = vector.broadcast %150 : vector<8x1xf32> to vector<8x32xf32>
    %182 = vector.broadcast %9 : vector<1x32xf32> to vector<8x32xf32>
    %183 = arith.mulf %181, %182 : vector<8x32xf32>
    %184 = arith.addf %180, %183 : vector<8x32xf32>
    %185 = arith.addf %112, %184 : vector<8x32xf32>
    %c0_65 = arith.constant 0 : index
    %c0_66 = arith.constant 0 : index
    %c0_67 = arith.constant 0 : index
    %186 = vector.load %arg8[%c0_65, %c0_66, %c0_67] : memref<1x8x32xf32, #tpu.memory_space<vmem>>, vector<1x8x32xf32>
    %187 = vector.shape_cast %186 : vector<1x8x32xf32> to vector<8x32xf32>
    %188 = vector.shape_cast %185 : vector<8x32xf32> to vector<1x8x32xf32>
    tpu.vector_store %arg8[%c0_65, %c0_66, %c0_67], %188 {strides = array<i32>} : memref<1x8x32xf32, #tpu.memory_space<vmem>>, vector<1x8x32xf32>,
    %189 = tpu.iota {dimensions = array<i32: 0>} : vector<8x8xi32>
    %190 = tpu.iota {dimensions = array<i32: 1>} : vector<8x8xi32>
    %191 = arith.cmpi eq, %189, %190 : vector<8x8xi32>
    %cst_68 = arith.constant 0.000000e+00 : f32
    %192 = vector.shape_cast %150 : vector<8x1xf32> to vector<8x1xf32>
    %193 = vector.broadcast %192 : vector<8x1xf32> to vector<8x8xf32>
    %194 = vector.broadcast %cst_68 : f32 to vector<8x8xf32>
    %195 = arith.select %191, %193, %194 : vector<8x8xi1>, vector<8x8xf32>
    %cst_69 = arith.constant dense<0.000000e+00> : vector<8xf32>
    %196 = vector.multi_reduction <add>, %195, %cst_69 [0] : vector<8x8xf32> to vector<8xf32>
    %197 = vector.shape_cast %196 : vector<8xf32> to vector<1x8xf32>
    %c0_70 = arith.constant 0 : index
    %c0_71 = arith.constant 0 : index
    %c0_72 = arith.constant 0 : index
    %198 = vector.load %arg9[%c0_70, %c0_71, %c0_72] : memref<1x1x8xf32, #tpu.memory_space<vmem>>, vector<1x1x8xf32>
    %199 = vector.shape_cast %198 : vector<1x1x8xf32> to vector<1x8xf32>
    %200 = vector.shape_cast %197 : vector<1x8xf32> to vector<1x1x8xf32>
    tpu.vector_store %arg9[%c0_70, %c0_71, %c0_72], %200 {strides = array<i32>} : memref<1x1x8xf32, #tpu.memory_space<vmem>>, vector<1x1x8xf32>,
    return
  }
  func.func @transform_0(%arg0: i32) -> (i32, i32, i32) {
    %c0_i32 = arith.constant 0 : i32
    %c0_i32_0 = arith.constant 0 : i32
    %c0_i32_1 = arith.constant 0 : i32
    return %arg0, %c0_i32, %c0_i32_0 : i32, i32, i32
  }
  func.func @transform_1(%arg0: i32) -> (i32, i32, i32) {
    %c0_i32 = arith.constant 0 : i32
    %c0_i32_0 = arith.constant 0 : i32
    %c0_i32_1 = arith.constant 0 : i32
    return %arg0, %c0_i32, %c0_i32_0 : i32, i32, i32
  }
  func.func @transform_2(%arg0: i32) -> (i32, i32) {
    %c0_i32 = arith.constant 0 : i32
    %c0_i32_0 = arith.constant 0 : i32
    %c0_i32_1 = arith.constant 0 : i32
    return %c0_i32, %c0_i32_0 : i32, i32
  }
  func.func @transform_3(%arg0: i32) -> (i32, i32) {
    %c0_i32 = arith.constant 0 : i32
    %c0_i32_0 = arith.constant 0 : i32
    %c0_i32_1 = arith.constant 0 : i32
    return %c0_i32, %c0_i32_0 : i32, i32
  }
  func.func @transform_4(%arg0: i32) -> (i32, i32) {
    %c0_i32 = arith.constant 0 : i32
    %c0_i32_0 = arith.constant 0 : i32
    %c0_i32_1 = arith.constant 0 : i32
    return %c0_i32, %c0_i32_0 : i32, i32
  }
  func.func @transform_5(%arg0: i32) -> (i32, i32) {
    %c0_i32 = arith.constant 0 : i32
    %c0_i32_0 = arith.constant 0 : i32
    %c0_i32_1 = arith.constant 0 : i32
    return %c0_i32, %c0_i32_0 : i32, i32
  }
  func.func @transform_6(%arg0: i32) -> (i32, i32) {
    %c0_i32 = arith.constant 0 : i32
    %c0_i32_0 = arith.constant 0 : i32
    %c0_i32_1 = arith.constant 0 : i32
    return %c0_i32, %c0_i32_0 : i32, i32
  }
  func.func @transform_7(%arg0: i32) -> (i32, i32, i32) {
    %c0_i32 = arith.constant 0 : i32
    %c0_i32_0 = arith.constant 0 : i32
    %c0_i32_1 = arith.constant 0 : i32
    return %arg0, %c0_i32, %c0_i32_0 : i32, i32, i32
  }
  func.func @transform_8(%arg0: i32) -> (i32, i32, i32) {
    %c0_i32 = arith.constant 0 : i32
    %c0_i32_0 = arith.constant 0 : i32
    %c0_i32_1 = arith.constant 0 : i32
    return %arg0, %c0_i32, %c0_i32_0 : i32, i32, i32
  }
}

</mosaic_0001>

<bundles_post_ra>
// kernel: tpu_custom_call.1
= control target key start
LH: loop header
LB: loop body
LE: loop exit
PB: predicated region body
PF: predicated region fallthrough
CT: control target
= control target key end

     0   :  { %s1689_s0 = inlined_call_operand.vmem [shape: f32[2,8,32], index: 0, kind: input, shape index: {}]   ;;  %s1690_s1 = inlined_call_operand.vmem [shape: f32[2,8,8], index: 1, kind: input, shape index: {}]   ;;  %s1691_s2 = inlined_call_operand.vmem [shape: f32[33,96], index: 2, kind: input, shape index: {}]   ;;  %s1692_s3 = inlined_call_operand.vmem [shape: f32[33,32], index: 3, kind: input, shape index: {}]   ;;  %s1693_s4 = inlined_call_operand.vmem [shape: f32[33,144], index: 4, kind: input, shape index: {}]   ;;  %s1694_s5 = inlined_call_operand.vmem [shape: f32[128,32], index: 5, kind: input, shape index: {}]   ;;  %s1695_s6 = inlined_call_operand.vmem [shape: f32[8,32], index: 6, kind: input, shape index: {}]   ;;  %s1696_s7 = inlined_call_operand.hbm [shape: f32[2,8,32], index: 7, kind: output, shape index: {0}]   ;;  %s1697_s8 = inlined_call_operand.hbm [shape: f32[2,1,8], index: 8, kind: output, shape index: {1}]  }
   0x1   :  { %1698 = sst [smem:[#allocation8_spill]] %s1689_s0 }
   0x2   :  { %1699 = sst [smem:[#allocation9_spill]] %s1690_s1 }
   0x3   :  { %14 = vsyncpa [#allocation3], 0 }
   0x4   :  { %16 = vsyncpa [#allocation3 + $0x1], 0 }
   0x5   :  { %17 = vsyncpa [#allocation5], 0 }
   0x6   :  { %19 = vsyncpa [#allocation5 + $0x1], 0  ;;  %s1378_s27 = smov 0   ;;  %s1380_s28 = smov 0  }
   0x7   :  { %s1382_s29 = smov 0   ;;  %s1384_s30 = smov 0  }
   0x8 LB: > { %s1399_s9 = sadd.s32 4294967295, %s1315_s30   ;;  %s1097_s10 = sadd.s32 4294967294, %s1315_s30   ;;  %s1315_s30 = sphi %s1384_s30, %s1707_s30   ;;  %s1311_s29 = sphi %s1382_s29, %s1706_s29   ;;  %s1307_s28 = sphi %s1380_s28, %s1705_s28   ;;  %s1303_s27 = sphi %s1378_s27, %s1704_s27  }
   0x9   : > { %s1403_s11 = sadd.s32 1, %s1315_s30   ;;  %s189_s12 = sadd.s32 1, %s1311_s29 }
   0xa   : > { %s186_s13 = ssub.s32 %s1315_s30, %s1403_s11  ;;  %p199_p0 = scmp.ne.s32.totalorder %s1311_s29, %s1307_s28 }
   0xb   : > { %p187_p1 = scmp.eq.s32.totalorder %s186_s13, 0  ;;  %p200_p2 = scmp.eq.s32.totalorder %s1399_s9, 1 }
   0xc   : > { %p205_p3 = scmp.ne.s32.totalorder %s1307_s28, %s1303_s27  ;;  %p206_p4 = scmp.eq.s32.totalorder %s1097_s10, 1 }
   0xd   : > { %s1414_s14 = scalar_select %p187_p1, %s1311_s29, %s189_s12  }
   0xe   : > { %p1416_p5 = por %p200_p2, %p199_p0  ;;  %p1420_p6 = por %p206_p4, %p205_p3 }
   0xf   : > { %p1100_p7 = scmp.ge.s32.totalorder %s1315_s30, 1  ;;  %p279_p8 = scmp.lt.s32.totalorder %s1315_s30, 3 }
  0x11   : > { %p280_p9 = pnand %p1100_p7, %p279_p8 }
  0x12   : > { %p320_p10 = scmp.lt.s32.totalorder (!%p280_p9), %s1399_s9, 1  ;;  %s1702_s0 = sld [smem:[#allocation8_spill]] (!%p280_p9) }
  0x13   : > { %283 = sbr.rel (%p280_p9) target bundleno = 2395 (0x95b), region = 48  ;;  %s1318_s25 = smov (!%p280_p9), 88  }
  0x14   : > { %s1319_s26 = smov (!%p280_p9), 96   ;;  %s1320_s10 = smov (!%p280_p9), 120  }
  0x15   : > { %s1321_s12 = smov (!%p280_p9), 64   ;;  %s1322_s13 = smov (!%p280_p9), 80  }
  0x16   : > { %s1323_s19 = smov (!%p280_p9), 112   ;;  %s1324_s20 = smov (!%p280_p9), 72  }
  0x17   : > { %s1703_s1 = sld [smem:[#allocation9_spill]] (!%p280_p9)  ;;  %s1327_s24 = smov (!%p280_p9), 48  }
  0x18   : > { %s1428_s17 = scalar_select %p320_p10, %s1399_s9, 1  ;;  %vm338_vm0 = vcmask 261120   ;;  %v1317_v2 = vmov 32.0   ;;  %v375_v14 = vld [vmem:[%s1691_s2 + $0x18] sm:$0xff]  ;;  %v374_v15 = vld [vmem:[%s1691_s2 + $0x10] sm:$0xff]  ;;  %v373_v16 = vld [vmem:[%s1691_s2 + $0x8] sm:$0xff] }
  0x19   : > { %1197 = vrcp.f32 %v1317_v2  ;;  %393 = vmatpush.msra.mxu0 %v375_v14  ;;  %v372_v17 = vld [vmem:[%s1691_s2] sm:$0xff]  ;;  %vm405_vm5 = vcmask 64512  }
  0x1a   : > { %s1102_s18 = sshll.u32 %s1428_s17, 3  ;;  %v1187_v27 = vld [vmem:[%s1695_s6] ss:$0 sm:$0xff]  ;;  %v1188_v30 = vld [vmem:[%s1695_s6 + $0x1] ss:$0 sm:$0xff]  ;;  %s1325_s17 = smov 104  }
  0x1b   : > { %s323_s21 = scalar_lea.vmem %s1702_s0, %s1102_s18  ;;  %394 = vmatpush.msra.mxu0 %v374_v15  ;;  %v1189_v33 = vld [vmem:[%s1691_s2 + $0x20] ss:$0 sm:$0xff] }
  0x1c   : > { %v1436_v0 = vld [vmem:[%s323_s21] sm:$0xff]  ;;  %s1630_s21 = sand.u32 1, %s1307_s28  }
  0x1d   : > { %v339_v1 = vsel %vm338_vm0, %v1436_v0, 0.0  ;;  %395 = vmatpush.msra.mxu0 %v373_v16  ;;  %s327_s23 = scalar_lea.vmem %s1703_s1, %s1102_s18  ;;  %s1326_s18 = smov 40  }
  0x1e   : > { %340 = vadd.xlane.f32.xlu0 %v339_v1  ;;  %v329_v43 = vld [vmem:[%s327_s23] sm:$0xff]  ;;  %s319_s22 = scalar_lea.vmem [#allocation4], %s1630_s21 }
  0x1f   : > { %v1198_v3 = vpop.eup %1197  ;;  %396 = vmatpush.msra.mxu0 %v372_v17 }
  0x20   : > { %v343_v4 = vmul.f32 32.0, %v1198_v3  ;;  %vm347_vm1 = vweird.f32 %v1198_v3 }
  0x22   : > { %v344_v5 = vsub.f32 1.0, %v343_v4 }
  0x24   : > { %v345_v6 = vmul.f32 %v1198_v3, %v344_v5 }
  0x26   : > { %v346_v7 = vadd.f32 %v1198_v3, %v345_v6 }
  0x28   : > { %v1440_v8 = vsel %vm347_vm1, %v1198_v3, %v346_v7 }
  0x91   : > { %v341_v9 = vpop.xlane.xlu0 %340 }
  0x92   : > { %v349_v10 = vmul.f32 %v1440_v8, %v341_v9 }
  0x94   : > { %v350_v11 = vsub.f32 %v1436_v0, %v349_v10 }
  0x96   : > { %v351_v12 = vmul.f32 %v350_v11, %v350_v11 }
  0x98   : > { %v352_v13 = vsel %vm338_vm0, %v351_v12, 0.0 }
  0x99   : > { %353 = vadd.xlane.f32.xlu0 %v352_v13 }
 0x10c   : > { %v354_v18 = vpop.xlane.xlu0 %353 }
 0x10d   : > { %v355_v19 = vmul.f32 %v354_v18, %v1440_v8 }
 0x10f   : > { %v356_v20 = vadd.f32 1e-05, %v355_v19 }
 0x111   : > { %1199 = vrsqrt.f32 %v356_v20  ;;  %vm363_vm3 = vweird.f32 %v356_v20 }
 0x117   : > { %v1200_v21 = vpop.eup %1199 }
 0x118   : > { %v358_v22 = vmul.f32 %v1200_v21, %v356_v20  ;;  %vm364_vm2 = vweird.f32 %v1200_v21 }
 0x119   : > { %vm365_vm4 = vmor %vm363_vm3, %vm364_vm2 }
 0x11a   : > { %v359_v23 = vmul.f32 %v1200_v21, %v358_v22 }
 0x11c   : > { %v360_v24 = vmul.f32 0.5, %v359_v23 }
 0x11e   : > { %v361_v25 = vsub.f32 1.5, %v360_v24 }
 0x120   : > { %v362_v26 = vmul.f32 %v1200_v21, %v361_v25 }
 0x122   : > { %v366_v28 = vsel %vm365_vm4, %v1200_v21, %v362_v26 }
 0x123   : > { %v367_v29 = vmul.f32 %v366_v28, %v350_v11 }
 0x125   : > { %v369_v31 = vmul.f32 %v1187_v27, %v367_v29 }
 0x127   : > { %v371_v32 = vadd.f32 %v1188_v30, %v369_v31 }
 0x129   : > { %1104 = vmatmul.msk.f32.vlgmr.msra.gmra.mxu0 %vm338_vm0, %v371_v32 }
 0x1a6   : > { %v398_v34 = vpop.f32.mrf.mxu0 }
 0x1a7   : > { %v1468_v35 = vadd.f32 %v1189_v33, %v398_v34 }
 0x1a9   : > { %483 = vrot.lane.b32.xlu2 %v1468_v35, %s1318_s25  ;;  %403 = vrot.lane.b32.xlu1 %v1468_v35, %s1319_s26  ;;  %v401_v36 = vmul.f32 0.35355338, %v1468_v35  ;;  %s1328_s25 = smov 56   ;;  %s1329_s26 = smov 8  }
 0x1ab   : > { %481 = vrot.lane.b32.xlu0 %v401_v36, %s1320_s10  ;;  %s1330_s10 = smov 24  }
 0x1b1   : > { %455 = vrot.lane.b32.xlu2 %v1468_v35, %s1321_s12  ;;  %s1331_s12 = smov 16  }
 0x1b3   : > { %561 = vrot.lane.b32.xlu0 %v1468_v35, %s1322_s13 }
 0x1b9   : > { %559 = vrot.lane.b32.xlu2 %v401_v36, %s1323_s19 }
 0x1bb   : > { %639 = vrot.lane.b32.xlu0 %v1468_v35, %s1324_s20  ;;  %s1241_s20 = scalar_lea.hbm %s1697_s8, 2 }
 0x203   : > { %v484_v37 = vpop.permute.xlu2 %483 }
 0x204   : > { %1108 = vmatpush.xpose.msk.msra.mxu3 %vm405_vm5, %v484_v37 }
 0x20b   : > { %v456_v39 = vpop.permute.xlu2 %455 }
 0x213   : > { %v560_v60 = vpop.permute.xlu2 %559 }
 0x21b   : > { %v404_v38 = vpop.permute.xlu1 %403 }
 0x21c   : > { %1105 = vmatpush.xpose.msk.msra.mxu1 %vm405_vm5, %v404_v38 }
 0x21d   : > { %v482_v40 = vpop.permute.xlu0 %481 }
 0x21e   : > { %1109 = vmatmul.msk.f32.vlgmr.msra.gmra.mxu3 %vm405_vm5, %v482_v40 }
 0x21f   : > { %1106 = vmatmul.msk.f32.vlgmr.msra.gmra.mxu1 %vm405_vm5, %v401_v36 }
 0x220   : > { %476 = vmatpush.msrb.mxu1 %v456_v39 }
 0x225   : > { %v562_v41 = vpop.permute.xlu0 %561 }
 0x226   : > { %1111 = vmatpush.xpose.msk.msra.mxu1 %vm405_vm5, %v562_v41 }
 0x22d   : > { %v640_v42 = vpop.permute.xlu0 %639 }
 0x22e   : > { %1114 = vmatpush.xpose.msk.msrb.mxu0 %vm405_vm5, %v640_v42 }
 0x29c   : > { %v428_v44 = vpop.f32.mrf.mxu1 }
 0x29d   : > { %v429_v45 = vadd.f32 %v428_v44, %v329_v43 }
 0x29f   : > { %v431_v46 = vsel %vm405_vm5, %v429_v45, -inf }
 0x2a0   : > { %432 = vmax.xlane.f32.xlu1 %v431_v46 }
 0x2a1   : > { %v506_v47 = vpop.f32.mrf.mxu3 }
 0x2a2   : > { %v507_v48 = vadd.f32 %v506_v47, %v329_v43 }
 0x2a4   : > { %v509_v49 = vsel %vm405_vm5, %v507_v48, -inf }
 0x2a8   : > { %510 = vmax.xlane.f32.xlu1 %v509_v49 }
 0x313   : > { %v433_v50 = vpop.xlane.xlu1 %432 }
 0x314   : > { %v434_v51 = vsub.f32 %v429_v45, %v433_v50 }
 0x316   : > { %v435_v52 = vmul.f32 1.442695, %v434_v51 }
 0x318   : > { %1201 = vpow2.f32 %v435_v52 }
 0x31b   : > { %v511_v53 = vpop.xlane.xlu1 %510 }
 0x31c   : > { %v512_v54 = vsub.f32 %v507_v48, %v511_v53 }
 0x31e   : > { %v1202_v55 = vpop.eup %1201  ;;  %v513_v56 = vmul.f32 1.442695, %v512_v54 }
 0x31f   : > { %v437_v57 = vsel %vm405_vm5, %v1202_v55, 0.0 }
 0x320   : > { %1203 = vpow2.f32 %v513_v56  ;;  %438 = vadd.xlane.f32.xlu2 %v437_v57 }
 0x326   : > { %v1490_v58 = vpop.eup %1203 }
 0x327   : > { %v515_v59 = vsel %vm405_vm5, %v1490_v58, 0.0 }
 0x328   : > { %516 = vadd.xlane.f32.xlu1 %v515_v59 }
 0x338   : > { %637 = vrot.lane.b32.xlu2 %v401_v36, %s1325_s17 }
 0x393   : > { %v439_v61 = vpop.xlane.xlu2 %438 }
 0x394   : > { %1205 = vrcp.f32 %v439_v61  ;;  %v451_v3 = vand.u32 2147483648, %v439_v61  ;;  %v449_v5 = vand.u32 2147483647, %v439_v61  ;;  %vm445_vm7 = vweird.f32 %v439_v61 }
 0x396   : > { %v452_v7 = vor.u32 1.1754944e-38, %v451_v3  ;;  %vm450_vm9 = vcmp.eq.f32.partialorder %v449_v5, 8.507059e+37 }
 0x39a   : > { %v1206_v62 = vpop.eup %1205 }
 0x39b   : > { %v441_v63 = vmul.f32 %v1206_v62, %v439_v61  ;;  %v638_v1 = vpop.permute.xlu2 %637  ;;  %vm446_vm6 = vweird.f32 %v1206_v62  ;;  %v517_v30 = vpop.xlane.xlu1 %516 }
 0x39c   : > { %1115 = vmatmul.msk.f32.vlgmr.msrb.gmra.mxu0 %vm405_vm5, %v638_v1  ;;  %vm447_vm8 = vmor %vm445_vm7, %vm446_vm6  ;;  %v529_v52 = vand.u32 2147483648, %v517_v30  ;;  %vm523_vm15 = vweird.f32 %v517_v30  ;;  %v527_v53 = vand.u32 2147483647, %v517_v30 }
 0x39d   : > { %v442_v2 = vsub.f32 1.0, %v441_v63 }
 0x39e   : > { %v530_v56 = vor.u32 1.1754944e-38, %v529_v52  ;;  %vm528_vm2 = vcmp.eq.f32.partialorder %v527_v53, 8.507059e+37  ;;  %v1118_v52 = vld [vmem:[%s1693_s4 + $0x40] ss:$8 sm:$0x3] }
 0x39f   : > { %v443_v4 = vmul.f32 %v1206_v62, %v442_v2  ;;  %v802_v53 = vperm.slane %v1118_v52, 1 }
 0x3a1   : > { %v444_v6 = vadd.f32 %v1206_v62, %v443_v4 }
 0x3a3   : > { %v448_v9 = vsel %vm447_vm8, %v1206_v62, %v444_v6  ;;  %vm728_vm8 = vcmask 130048  }
 0x3a4   : > { %v453_v10 = vsel %vm450_vm9, %v452_v7, %v448_v9  ;;  %vm730_vm9 = vcmask 195584  }
 0x3a5   : > { %v454_v11 = vmul.f32 %v1202_v55, %v453_v10  ;;  %v736_v10 = vld [vmem:[%s1692_s3 + $0x10] sm:$0xff] }
 0x3a7   : > { %1107 = vmatmul.msk.f32.vlgmr.msrb.gmra.mxu1 %vm405_vm5, %v454_v11  ;;  %v735_v11 = vld [vmem:[%s1692_s3 + $0x8] sm:$0xff] }
 0x3af   : > { %1112 = vmatmul.msk.f32.vlgmr.msra.gmra.mxu1 %vm405_vm5, %v560_v60 }
 0x419   : > { %v662_v12 = vpop.f32.mrf.mxu0 }
 0x41a   : > { %v663_v13 = vadd.f32 %v662_v12, %v329_v43  ;;  %v734_v12 = vld [vmem:[%s1692_s3] sm:$0xff] }
 0x41c   : > { %v665_v14 = vsel %vm405_vm5, %v663_v13, -inf }
 0x41d   : > { %666 = vmax.xlane.f32.xlu2 %v665_v14  ;;  %v1190_v14 = vld [vmem:[%s1695_s6 + $0x6] ss:$0 sm:$0xff] }
 0x424   : > { %v1498_v15 = vpop.f32.mrf.mxu1 }
 0x42c   : > { %v584_v16 = vpop.f32.mrf.mxu1 }
 0x42d   : > { %v585_v17 = vadd.f32 %v584_v16, %v329_v43 }
 0x42f   : > { %v587_v18 = vsel %vm405_vm5, %v585_v17, -inf }
 0x430   : > { %588 = vmax.xlane.f32.xlu0 %v587_v18 }
 0x435   : > { %689 = vrot.lane.b32.xlu2 %v1468_v35, %s1326_s18  ;;  %s993_s18 = scalar_lea.hbm %s1697_s8, %s1399_s9 }
 0x444   : > { %611 = vrot.lane.b32.xlu0 %v1468_v35, %s1327_s24  ;;  %s995_s24 = sshll.u32 %s319_s22, 4  ;;  %s996_s24 = int_to_ptr.vmem [resolvable:$true] %s995_s24 }
 0x490   : > { %v667_v19 = vpop.xlane.xlu2 %666 }
 0x491   : > { %v668_v20 = vsub.f32 %v663_v13, %v667_v19 }
 0x493   : > { %v669_v21 = vmul.f32 1.442695, %v668_v20 }
 0x495   : > { %1207 = vpow2.f32 %v669_v21 }
 0x498   : > { %v690_v22 = vpop.permute.xlu2 %689 }
 0x499   : > { %710 = vmatpush.msra.mxu0 %v690_v22  ;;  %v1191_v22 = vld [vmem:[%s1692_s3 + $0x20] ss:$0 sm:$0xff] }
 0x49b   : > { %v1208_v23 = vpop.eup %1207 }
 0x49c   : > { %v671_v24 = vsel %vm405_vm5, %v1208_v23, 0.0 }
 0x49d   : > { %672 = vadd.xlane.f32.xlu1 %v671_v24 }
 0x4a3   : > { %v589_v25 = vpop.xlane.xlu0 %588 }
 0x4a4   : > { %v590_v26 = vsub.f32 %v585_v17, %v589_v25 }
 0x4a6   : > { %v591_v27 = vmul.f32 1.442695, %v590_v26 }
 0x4a8   : > { %1209 = vpow2.f32 %v591_v27 }
 0x4ae   : > { %v1210_v28 = vpop.eup %1209 }
 0x4af   : > { %v593_v29 = vsel %vm405_vm5, %v1210_v28, 0.0 }
 0x4b0   : > { %594 = vadd.xlane.f32.xlu1 %v593_v29 }
 0x4b6   : > { %v612_v1 = vpop.permute.xlu0 %611 }
 0x4c9   : > { %533 = vrot.lane.b32.xlu1 %v1468_v35, %s1328_s25  ;;  %s997_s25 = sshll.u32 %s993_s18, 4  ;;  %s998_s25 = int_to_ptr.hbm [resolvable:$true] %s997_s25 }
 0x510   : > { %v673_v31 = vpop.xlane.xlu1 %672 }
 0x511   : > { %1211 = vrcp.f32 %v673_v31  ;;  %v685_v36 = vand.u32 2147483648, %v673_v31  ;;  %v683_v38 = vand.u32 2147483647, %v673_v31  ;;  %vm679_vm11 = vweird.f32 %v673_v31 }
 0x512   : > { %1213 = vrcp.f32 %v517_v30 }
 0x513   : > { %v686_v40 = vor.u32 1.1754944e-38, %v685_v36  ;;  %vm684_vm13 = vcmp.eq.f32.partialorder %v683_v38, 8.507059e+37  ;;  %v793_v36 = vld [vmem:[%s1693_s4 + $0x18] sm:$0xff]  ;;  %v791_v38 = vld [vmem:[%s1693_s4 + $0x8] sm:$0xff] }
 0x517   : > { %v1212_v32 = vpop.eup %1211 }
 0x518   : > { %v675_v33 = vmul.f32 %v1212_v32, %v673_v31  ;;  %vm680_vm10 = vweird.f32 %v1212_v32  ;;  %v1214_v43 = vpop.eup %1213  ;;  %v796_v31 = vld [vmem:[%s1693_s4 + $0x30] sm:$0xff] }
 0x519   : > { %vm681_vm12 = vmor %vm679_vm11, %vm680_vm10  ;;  %v519_v45 = vmul.f32 %v1214_v43, %v517_v30  ;;  %vm524_vm14 = vweird.f32 %v1214_v43 }
 0x51a   : > { %v676_v34 = vsub.f32 1.0, %v675_v33  ;;  %vm525_vm1 = vmor %vm523_vm15, %vm524_vm14  ;;  %v795_v33 = vld [vmem:[%s1693_s4 + $0x28] sm:$0xff] }
 0x51b   : > { %v520_v46 = vsub.f32 1.0, %v519_v45 }
 0x51c   : > { %v677_v37 = vmul.f32 %v1212_v32, %v676_v34  ;;  %v792_v34 = vld [vmem:[%s1693_s4 + $0x10] sm:$0xff] }
 0x51d   : > { %v521_v48 = vmul.f32 %v1214_v43, %v520_v46 }
 0x51e   : > { %v678_v39 = vadd.f32 %v1212_v32, %v677_v37  ;;  %v790_v37 = vld [vmem:[%s1693_s4] sm:$0xff] }
 0x51f   : > { %v522_v50 = vadd.f32 %v1214_v43, %v521_v48 }
 0x520   : > { %v682_v41 = vsel %vm681_vm12, %v1212_v32, %v678_v39  ;;  %v794_v32 = vld [vmem:[%s1693_s4 + $0x20] sm:$0xff] }
 0x521   : > { %v687_v42 = vsel %vm684_vm13, %v686_v40, %v682_v41  ;;  %v526_v55 = vsel %vm525_vm1, %v1214_v43, %v522_v50 }
 0x522   : > { %v688_v35 = vmul.f32 %v1208_v23, %v687_v42  ;;  %v531_v57 = vsel %vm528_vm2, %v530_v56, %v526_v55  ;;  %v1194_v56 = vld [vmem:[%s1695_s6 + $0x7] ss:$0 sm:$0xff] }
 0x523   : > { %v595_v44 = vpop.xlane.xlu1 %594  ;;  %v532_v63 = vmul.f32 %v1490_v58, %v531_v57  ;;  %v737_v58 = vld [vmem:[%s1692_s3 + $0x18] sm:$0xff] }
 0x524   : > { %1215 = vrcp.f32 %v595_v44  ;;  %1116 = vmatmul.msk.f32.vlgmr.msra.gmra.mxu0 %vm405_vm5, %v688_v35  ;;  %v607_v60 = vand.u32 2147483648, %v595_v44  ;;  %vm601_vm4 = vweird.f32 %v595_v44  ;;  %v605_v61 = vand.u32 2147483647, %v595_v44  ;;  %755 = vmatpush.msrb.mxu1 %v737_v58  ;;  %v913_v58 = vld [vmem:[%s1694_s5 + $0x20] sm:$0xff] }
 0x526   : > { %v608_v3 = vor.u32 1.1754944e-38, %v607_v60  ;;  %vm606_vm7 = vcmp.eq.f32.partialorder %v605_v61, 8.507059e+37  ;;  %756 = vmatpush.msrb.mxu1 %v736_v10  ;;  %v923_v60 = vld [vmem:[%s1694_s5 + $0x70] sm:$0xff]  ;;  %v801_v10 = vperm.slane %v1118_v52, 0 }
 0x528   : > { %757 = vmatpush.msrb.mxu1 %v735_v11 }
 0x52a   : > { %v1216_v47 = vpop.eup %1215  ;;  %758 = vmatpush.msrb.mxu1 %v734_v12 }
 0x52b   : > { %v597_v49 = vmul.f32 %v1216_v47, %v595_v44  ;;  %vm602_vm3 = vweird.f32 %v1216_v47 }
 0x52c   : > { %vm603_vm6 = vmor %vm601_vm4, %vm602_vm3 }
 0x52d   : > { %v598_v51 = vsub.f32 1.0, %v597_v49 }
 0x52f   : > { %v599_v54 = vmul.f32 %v1216_v47, %v598_v51 }
 0x531   : > { %v600_v59 = vadd.f32 %v1216_v47, %v599_v54 }
 0x533   : > { %v604_v2 = vsel %vm603_vm6, %v1216_v47, %v600_v59  ;;  %v1192_v47 = vld [vmem:[%s1695_s6 + $0x2] ss:$0 sm:$0xff]  ;;  %v924_v59 = vld [vmem:[%s1694_s5 + $0x78] sm:$0xff]  ;;  %vm963_vm6 = vcmask 57344  }
 0x534   : > { %v609_v4 = vsel %vm606_vm7, %v608_v3, %v604_v2  ;;  %927 = vmatpush.msra.mxu2 %v924_v59  ;;  %v920_v2 = vld [vmem:[%s1694_s5 + $0x58] sm:$0xff]  ;;  %v919_v3 = vld [vmem:[%s1694_s5 + $0x50] sm:$0xff]  ;;  %v1332_v59 = vmov 0.0  }
 0x535   : > { %v610_v5 = vmul.f32 %v1210_v28, %v609_v4  ;;  %v918_v4 = vld [vmem:[%s1694_s5 + $0x48] sm:$0xff] }
 0x536   : > { %928 = vmatpush.msra.mxu2 %v923_v60 }
 0x53b   : > { %v534_v62 = vpop.permute.xlu1 %533 }
 0x53c   : > { %554 = vmatpush.msrb.mxu3 %v534_v62  ;;  %v922_v62 = vld [vmem:[%s1694_s5 + $0x68] sm:$0xff] }
 0x53d   : > { %1110 = vmatmul.msk.f32.vlgmr.msrb.gmra.mxu3 %vm405_vm5, %v532_v63  ;;  %929 = vmatpush.msra.mxu2 %v922_v62 }
 0x53e   : > { %632 = vmatpush.msra.mxu3 %v612_v1  ;;  %v921_v1 = vld [vmem:[%s1694_s5 + $0x60] sm:$0xff] }
 0x53f   : > { %930 = vmatpush.msra.mxu2 %v921_v1 }
 0x540   : > { %820 = vmatpush.msrb.mxu3 %v796_v31 }
 0x541   : > { %931 = vmatpush.msra.mxu2 %v920_v2 }
 0x542   : > { %821 = vmatpush.msrb.mxu3 %v794_v32  ;;  %v912_v32 = vld [vmem:[%s1694_s5 + $0x18] sm:$0xff] }
 0x543   : > { %932 = vmatpush.msra.mxu2 %v919_v3 }
 0x544   : > { %822 = vmatpush.msrb.mxu3 %v792_v34 }
 0x545   : > { %1113 = vmatmul.msk.f32.vlgmr.msra.gmra.mxu3 %vm405_vm5, %v610_v5  ;;  %v917_v5 = vld [vmem:[%s1694_s5 + $0x40] sm:$0xff]  ;;  %933 = vmatpush.msra.mxu2 %v918_v4 }
 0x546   : > { %823 = vmatpush.msrb.mxu3 %v790_v37  ;;  %v910_v37 = vld [vmem:[%s1694_s5 + $0x8] sm:$0xff] }
 0x547   : > { %934 = vmatpush.msra.mxu2 %v917_v5 }
 0x5a1   : > { %v712_v7 = vpop.f32.mrf.mxu0 }
 0x5c0   : > { %v556_v6 = vpop.f32.mrf.mxu3 }
 0x5c1   : > { %716 = vrot.lane.b32.xlu1 %v556_v6, %s1329_s26  ;;  %v916_v6 = vld [vmem:[%s1694_s5 + $0x38] sm:$0xff]  ;;  %s971_s26 = scalar_lea.sflag [#allocation5], %s1630_s21 }
 0x5c2   : > { %935 = vmatpush.msra.mxu2 %v916_v6 }
 0x5c8   : > { %v634_v9 = vpop.f32.mrf.mxu3 }
 0x5c9   : > { %724 = vrot.lane.b32.xlu1 %v712_v7, %s1330_s10  ;;  %720 = vrot.lane.b32.xlu0 %v634_v9, %s1331_s12  ;;  %v915_v7 = vld [vmem:[%s1694_s5 + $0x30] sm:$0xff]  ;;  %v914_v9 = vld [vmem:[%s1694_s5 + $0x28] sm:$0xff]  ;;  %s1235_s10 = sshra.s32 %s998_s25, 4  ;;  %s1236_s10 = int_to_ptr.hbm [resolvable:$true] %s1235_s10 }
 0x5ca   : > { %936 = vmatpush.msra.mxu2 %v915_v7  ;;  %s1237_s12 = scalar_lea.hbm %s1236_s10, 1  ;;  %p1242_p0 = scmp.lt.s32.totalorder %s1236_s10, %s1697_s8 }
 0x5cb   : > { %p1238_p11 = scmp.ne.s32.totalorder %s1236_s10, %s1237_s12  ;;  %p1243_p1 = scmp.lt.s32.totalorder %s1241_s20, %s1237_s12 }
 0x5cc   : > { %937 = vmatpush.msra.mxu2 %v914_v9 }
 0x5cd   : > { %p1239_p12 = pnand %p1238_p11, %p1416_p5  ;;  %p1244_p2 = por %p1243_p1, %p1242_p0 }
 0x5ce   : > { %938 = vmatpush.msra.mxu2 %v913_v58 }
 0x5cf   : > { %p1240_p13 = pneg %p1239_p12 }
 0x5d0   : > { %939 = vmatpush.msra.mxu2 %v912_v32 }
 0x5d1   : > { %p1245_p3 = pnand %p1244_p2, %p1240_p13 }
 0x633   : > { %v717_v13 = vpop.permute.xlu1 %716 }
 0x634   : > { %v727_v16 = vsel %vm405_vm5, %v1498_v15, %v717_v13 }
 0x63b   : > { %v725_v17 = vpop.permute.xlu1 %724  ;;  %v721_v18 = vpop.permute.xlu0 %720 }
 0x63c   : > { %v729_v19 = vsel %vm728_vm8, %v727_v16, %v721_v18 }
 0x63d   : > { %v731_v20 = vsel %vm730_vm9, %v729_v19, %v725_v17 }
 0x63e   : > { %v733_v21 = vmul.f32 %v1190_v14, %v731_v20 }
 0x640   : > { %1117 = vmatmul.msk.f32.vlgmr.msrb.gmra.mxu1 %vm338_vm0, %v733_v21 }
 0x6bd   : > { %v760_v23 = vpop.f32.mrf.mxu1 }
 0x6be   : > { %v761_v24 = vadd.f32 %v1191_v22, %v760_v23 }
 0x6c0   : > { %v1533_v25 = vadd.f32 %v761_v24, %v1436_v0  ;;  %v797_v0 = vld [vmem:[%s1693_s4 + $0x38] sm:$0xff] }
 0x6c1   : > { %840 = vmatpush.msrb.mxu0 %v797_v0 }
 0x6c2   : > { %v764_v15 = vsel %vm338_vm0, %v1533_v25, 0.0 }
 0x6c3   : > { %765 = vadd.xlane.f32.xlu2 %v764_v15  ;;  %841 = vmatpush.msrb.mxu0 %v795_v33 }
 0x6c5   : > { %842 = vmatpush.msrb.mxu0 %v793_v36  ;;  %v911_v36 = vld [vmem:[%s1694_s5 + $0x10] sm:$0xff] }
 0x6c6   : > { %940 = vmatpush.msra.mxu2 %v911_v36 }
 0x6c7   : > { %843 = vmatpush.msrb.mxu0 %v791_v38 }
 0x6c8   : > { %941 = vmatpush.msra.mxu2 %v910_v37 }
 0x736   : > { %v766_v26 = vpop.xlane.xlu2 %765 }
 0x737   : > { %v767_v27 = vmul.f32 %v766_v26, %v1440_v8 }
 0x739   : > { %v768_v28 = vsub.f32 %v1533_v25, %v767_v27 }
 0x73b   : > { %v769_v29 = vmul.f32 %v768_v28, %v768_v28 }
 0x73d   : > { %v770_v30 = vsel %vm338_vm0, %v769_v29, 0.0 }
 0x73e   : > { %771 = vadd.xlane.f32.xlu0 %v770_v30 }
 0x7b1   : > { %v772_v39 = vpop.xlane.xlu0 %771 }
 0x7b2   : > { %v773_v40 = vmul.f32 %v772_v39, %v1440_v8  ;;  %v1193_v8 = vld [vmem:[%s1695_s6 + $0x3] ss:$0 sm:$0xff] }
 0x7b4   : > { %v774_v41 = vadd.f32 1e-05, %v773_v40  ;;  %v909_v40 = vld [vmem:[%s1694_s5] sm:$0xff] }
 0x7b5   : > { %942 = vmatpush.msra.mxu2 %v909_v40 }
 0x7b6   : > { %1217 = vrsqrt.f32 %v774_v41  ;;  %vm781_vm11 = vweird.f32 %v774_v41 }
 0x7bc   : > { %v1218_v42 = vpop.eup %1217 }
 0x7bd   : > { %v776_v43 = vmul.f32 %v1218_v42, %v774_v41  ;;  %vm782_vm10 = vweird.f32 %v1218_v42 }
 0x7be   : > { %vm783_vm12 = vmor %vm781_vm11, %vm782_vm10 }
 0x7bf   : > { %v777_v35 = vmul.f32 %v1218_v42, %v776_v43 }
 0x7c1   : > { %v778_v44 = vmul.f32 0.5, %v777_v35 }
 0x7c3   : > { %v779_v45 = vsub.f32 1.5, %v778_v44 }
 0x7c5   : > { %v780_v46 = vmul.f32 %v1218_v42, %v779_v45 }
 0x7c7   : > { %v784_v48 = vsel %vm783_vm12, %v1218_v42, %v780_v46 }
 0x7c8   : > { %v785_v49 = vmul.f32 %v784_v48, %v768_v28 }
 0x7ca   : > { %v787_v50 = vmul.f32 %v1192_v47, %v785_v49 }
 0x7cc   : > { %v789_v51 = vadd.f32 %v1193_v8, %v787_v50  ;;  %v901_v50 = vlaneseq }
 0x7ce   : > { %1119 = vmatmul.msk.f32.vlgmr.msrb.gmra.mxu3 %vm338_vm0, %v789_v51  ;;  %1120 = vmatmul.msk.f32.vlgmr.msrb.gmra.mxu0 %vm338_vm0, %v789_v51  ;;  %v902_v52 = vand.u32 127, %v901_v50 }
 0x7d0   : > { %vm903_vm4 = vcmp.lt.s32.totalorder %v902_v52, 64 }
 0x84b   : > { %v845_v54 = vpop.f32.mrf.mxu0 }
 0x84c   : > { %v846_v55 = vadd.f32 %v845_v54, %v802_v53  ;;  %v953_v53 = vshrl.u32 %v901_v50, 7 }
 0x84e   : > { %v848_v57 = vmax.f32 %v846_v55, 0.0  ;;  %vm954_vm2 = vcmp.eq.s32.totalorder %v953_v53, %v902_v52 }
 0x850   : > { %v850_v61 = vmul.f32 %v1194_v56, %v848_v57 }
 0x851   : > { %v825_v11 = vpop.f32.mrf.mxu3 }
 0x852   : > { %v851_v63 = vsel %vm728_vm8, %v850_v61, 0.0  ;;  %v826_v12 = vadd.f32 %v825_v11, %v801_v10 }
 0x853   : > { %852 = vadd.xlane.f32.xlu1 %v851_v63 }
 0x854   : > { %v858_v13 = vmul.f32 0.70710677, %v826_v12  ;;  %v857_v57 = vmul.f32 0.5, %v826_v12 }
 0x856   : > { %v859_v14 = vmul.f32 %v858_v13, %v858_v13 }
 0x858   : > { %v860_v16 = vmin.f32 %v859_v14, 16.0 }
 0x85a   : > { %v872_v17 = vmul.f32 3.8918573e-05, %v860_v16  ;;  %v861_v15 = vmul.f32 2.1237322e-06, %v860_v16 }
 0x85c   : > { %v873_v18 = vadd.f32 0.001143296, %v872_v17  ;;  %v862_v27 = vadd.f32 0.00028619796, %v861_v15 }
 0x85e   : > { %v874_v19 = vmul.f32 %v873_v18, %v860_v16  ;;  %v863_v29 = vmul.f32 %v862_v27, %v860_v16 }
 0x860   : > { %v875_v20 = vadd.f32 0.014752088, %v874_v19  ;;  %v864_v30 = vadd.f32 0.0036580483, %v863_v29 }
 0x862   : > { %v876_v21 = vmul.f32 %v875_v20, %v860_v16  ;;  %v865_v31 = vmul.f32 %v864_v30, %v860_v16 }
 0x864   : > { %v877_v22 = vadd.f32 0.112945676, %v876_v21  ;;  %v866_v33 = vadd.f32 0.05243302, %v865_v31 }
 0x866   : > { %v878_v23 = vmul.f32 %v877_v22, %v860_v16  ;;  %v867_v38 = vmul.f32 %v866_v33, %v860_v16 }
 0x868   : > { %v879_v24 = vadd.f32 0.4994258, %v878_v23  ;;  %v868_v41 = vadd.f32 0.18741608, %v867_v38 }
 0x86a   : > { %v880_v26 = vmul.f32 %v879_v24, %v860_v16  ;;  %v869_v43 = vmul.f32 %v868_v41, %v860_v16 }
 0x86c   : > { %v881_v28 = vadd.f32 1.0, %v880_v26  ;;  %v870_v46 = vadd.f32 1.1283791, %v869_v43 }
 0x86e   : > { %1219 = vrcp.f32 %v881_v28  ;;  %v893_v44 = vand.u32 2147483648, %v881_v28  ;;  %vm887_vm14 = vweird.f32 %v881_v28  ;;  %v891_v45 = vand.u32 2147483647, %v881_v28 }
 0x86f   : > { %v871_v8 = vmul.f32 %v870_v46, %v858_v13 }
 0x870   : > { %v894_v48 = vor.u32 1.1754944e-38, %v893_v44  ;;  %vm892_vm1 = vcmp.eq.f32.partialorder %v891_v45, 8.507059e+37 }
 0x874   : > { %v1220_v0 = vpop.eup %1219 }
 0x875   : > { %v883_v34 = vmul.f32 %v1220_v0, %v881_v28  ;;  %vm888_vm13 = vweird.f32 %v1220_v0 }
 0x876   : > { %vm889_vm15 = vmor %vm887_vm14, %vm888_vm13 }
 0x877   : > { %v884_v39 = vsub.f32 1.0, %v883_v34 }
 0x879   : > { %v885_v42 = vmul.f32 %v1220_v0, %v884_v39 }
 0x87b   : > { %v886_v35 = vadd.f32 %v1220_v0, %v885_v42 }
 0x87d   : > { %v890_v47 = vsel %vm889_vm15, %v1220_v0, %v886_v35 }
 0x87e   : > { %v895_v49 = vsel %vm892_vm1, %v894_v48, %v890_v47 }
 0x87f   : > { %v896_v51 = vmul.f32 %v895_v49, %v871_v8 }
 0x881   : > { %v1122_v54 = vclamps-f32 %v896_v51, 1.0 }
 0x883   : > { %v899_v56 = vadd.f32 1.0, %v1122_v54 }
 0x885   : > { %v900_v1 = vmul.f32 %v899_v56, %v857_v57 }
 0x8c6   : > { %v853_v55 = vpop.xlane.xlu1 %852 }
 0x8c7   : > { %vm854_vm3 = vcmp.ge.f32.partialorder %v853_v55, 0.0 }
 0x8c8   : > { %v1121_v60 = vsel %vm854_vm3, 1.0, %v1332_v59 }
 0x8c9   : > { %v904_v61 = vsub.f32 1.0, %v1121_v60  ;;  %v955_v62 = vsel %vm954_vm2, %v1121_v60, 0.0 }
 0x8ca   : > { %v956_v63 = vsel %vm405_vm5, %v955_v62, 0.0 }
 0x8cb   : > { %v957_v2 = vrot.slane %v956_v63, 4  ;;  %v907_v3 = vsel %vm903_vm4, %v904_v61, %v1121_v60 }
 0x8cc   : > { %v908_v4 = vmul.f32 %v907_v3, %v900_v1 }
 0x8cd   : > { %v958_v5 = vadd.f32 %v957_v2, %v956_v63 }
 0x8ce   : > { %943 = vmatmul.f32.vlgmr.msra.gmra.mxu2 %v908_v4 }
 0x8cf   : > { %v959_v6 = vrot.slane %v958_v5, 2 }
 0x8d1   : > { %v960_v7 = vadd.f32 %v959_v6, %v958_v5 }
 0x8d3   : > { %v961_v9 = vrot.slane %v960_v7, 1 }
 0x8d5   : > { %v962_v58 = vadd.f32 %v961_v9, %v960_v7 }
 0x8d7   : > { %964 = vst.msk [vmem:[%s319_s22] sm:$0x1] %vm963_vm6, %v962_v58 }
 0x8d8   : > { %1248 = shalt.err (!%p1245_p3)
}
 0x8d9   : > { %1128 = dma.vmem_to_hbm [thread:$0]  (%p1416_p5), %s996_s24, 16, %s998_s25, %s971_s26   ;;  %v1195_v10 = vld [vmem:[%s1695_s6 + $0x4] ss:$0 sm:$0xff]  ;;  %v1196_v11 = vld [vmem:[%s1695_s6 + $0x5] ss:$0 sm:$0xff] }
 0x8da   : > { %s1101_s17 = sshll.u32 %s1630_s21, 3  ;;  %s1124_s18 = sshll.u32 %s1399_s9, 3  ;;  %v926_v12 = vmul.f32 %v1195_v10, %v904_v61  ;;  %v948_v16 = vmul.f32 %v1196_v11, %v1121_v60 }
 0x8db   : > { %s980_s10 = scalar_lea.hbm %s1696_s7, %s1124_s18  ;;  %s313_s24 = scalar_lea.vmem [#allocation2], %s1101_s17 }
 0x8dc   : > { %s982_s25 = sshll.u32 %s313_s24, 4  ;;  %s984_s26 = sshll.u32 %s980_s10, 4  ;;  %s983_s25 = int_to_ptr.vmem [resolvable:$true] %s982_s25  ;;  %s985_s26 = int_to_ptr.hbm [resolvable:$true] %s984_s26 }
 0x8dd   : > { %s966_s9 = scalar_lea.sflag [#allocation3], %s1630_s21  ;;  %s1263_s12 = sshra.s32 %s985_s26, 4  ;;  %s1264_s12 = int_to_ptr.hbm [resolvable:$true] %s1263_s12 }
 0x8de   : > { %s1265_s20 = scalar_lea.hbm %s1264_s12, 8  ;;  %s1269_s17 = scalar_lea.hbm %s1696_s7, 16 }
 0x8df   : > { %p1266_p4 = scmp.ne.s32.totalorder %s1264_s12, %s1265_s20  ;;  %p1270_p9 = scmp.lt.s32.totalorder %s1264_s12, %s1696_s7 }
 0x8e0   : > { %p1271_p10 = scmp.lt.s32.totalorder %s1269_s17, %s1265_s20 }
 0x8e1   : > { %p1267_p7 = pnand %p1266_p4, %p1416_p5 }
 0x8e2   : > { %p1272_p11 = por %p1271_p10, %p1270_p9 }
 0x8e3   : > { %p1268_p8 = pneg %p1267_p7 }
 0x8e5   : > { %p1273_p12 = pnand %p1272_p11, %p1268_p8 }
 0x951   : > { %v944_v13 = vpop.f32.mrf.mxu2 }
 0x952   : > { %v945_v14 = vadd.f32 %v944_v13, %v926_v12 }
 0x954   : > { %v949_v17 = vadd.f32 %v948_v16, %v945_v14 }
 0x956   : > { %v950_v18 = vadd.f32 %v949_v17, %v1533_v25 }
 0x958   : > { %951 = vst.msk [vmem:[%s313_s24] sm:$0xff] %vm338_vm0, %v950_v18 }
 0x959   : > { %1276 = shalt.err (!%p1273_p12)
}
 0x95a   : > { %1127 = dma.vmem_to_hbm [thread:$0]  (%p1416_p5), %s983_s25, 128, %s985_s26, %s966_s9  }
 0x95b PF: > { %p1138_p13 = scmp.ge.s32.totalorder %s1315_s30, 2  ;;  %s1009_s21 = sand.u32 1, %s1303_s27  }
 0x95c   : > { %s1010_s19 = scalar_lea.sflag [#allocation3], %s1009_s21 }
 0x95d   : > { %p1132_p0 = pnand %p1138_p13, %p1420_p6 }
 0x95f   : > { %p1133_p1 = pneg %p1132_p0 }
 0x961   : > { %1294 = dma.done.wait (%p1133_p1), %s1010_s19, 128  }
 0x962   : > { %1296 = vsyncadd (%p1133_p1), %s1010_s19, 4294967168  ;;  %s1020_s0 = scalar_lea.sflag [#allocation5], %s1009_s21 }
 0x963   : > { %1298 = dma.done.wait (%p1133_p1), %s1020_s0, 16  }
 0x964   : > { %1300 = vsyncadd (%p1133_p1), %s1020_s0, 4294967280  ;;  %p22_p5 = scmp.ge.s32.totalorder %s1403_s11, 4   ;;  %s1704_s27 = smov %s1307_s28 }
 0x965   : > { %s1705_s28 = smov %s1311_s29  ;;  %s1706_s29 = smov %s1414_s14 }
 0x966   : > { %s1707_s30 = smov %s1403_s11  ;;  %24 = sbr.rel (!%p22_p5) target bundleno = 8 (0x8), region = 104 }
 0x96b   :  { %1025 = vsyncpa [#allocation3], 1 }
 0x96c   :  { %1027 = vsyncpa [#allocation3 + $0x1], 1 }
 0x96d   :  { %1028 = vsyncpa [#allocation5], 1 }
 0x96e   :  { %1030 = vsyncpa [#allocation5 + $0x1], 1 }

</bundles_post_ra>
